<compile_context>
chip_gen: v7x
topology: tpu7x:2x2x1
jax: 0.10.0
libtpu: 0.0.40
codegen_flags: <defaults>
</compile_context>

<pallas_src>
import math

import jax
import jax.numpy as jnp
from jax.experimental import pallas as pl
from jax.experimental.pallas import tpu as pltpu

_LANES = 128
_SUBLANES = 8
# 2048*128*4B = 1 MiB per f32 input block -> 2 inputs x 2 pipeline buffers
# ~= 4 MiB live VMEM: inside the measured tile sweet spot and well under the
# default scoped-VMEM budget on v5e / v6e / v7x (64 MiB physical on v7x).
_ROWS_TARGET = 2048


def _cdiv(a, b):
    return -(-a // b)


def _make_kernel(n_valid, rows, tiles_per_split, needs_mask):
    groups = rows // _SUBLANES

    def kernel(pred_ref, targ_ref, out_ref):
        s = pl.program_id(1)          # split index (v7x dual-core when B == 1)
        k = pl.program_id(2)          # N-reduction tile index (innermost)

        @pl.when(k == 0)
        def _init():
            out_ref[...] = jnp.zeros_like(out_ref)

        # Inputs stay in their caller dtype over HBM; cast once in VMEM.
        x = pred_ref[0].astype(jnp.float32)      # (rows, 128)
        t = targ_ref[0].astype(jnp.float32)      # (rows, 128)

        # Share exp(-|x|) between BCE and sigmoid (one EUP exp per element):
        #   bce       = max(x,0) - x*t + log(1 + exp(-|x|))
        #   sigmoid   = 1/(1+e) if x >= 0 else e/(1+e),  e = exp(-|x|)
        e = jnp.exp(-jnp.abs(x))
        bce = jnp.maximum(x, 0.0) - x * t + jnp.log(1.0 + e)
        pos = 1.0 / (1.0 + e)                    # exact divide: keep 1e-5 tol
        sig = jnp.where(x >= 0.0, pos, e * pos)

        if needs_mask:
            # Zero out contributions from the zero-padded tail of N
            # (BCE(0,0)=log 2 and sigmoid(0)=0.5 would otherwise bias sums).
            tile = s * tiles_per_split + k
            row = jax.lax.broadcasted_iota(jnp.int32, (rows, _LANES), 0)
            lane = jax.lax.broadcasted_iota(jnp.int32, (rows, _LANES), 1)
            flat = (tile * rows + row) * _LANES + lane
            valid = flat < n_valid
            bce = jnp.where(valid, bce, 0.0)
            sig = jnp.where(valid, sig, 0.0)
            t = jnp.where(valid, t, 0.0)

        def fold(v):
            # (rows, 128) -> (8, 128): tile-aligned reshape + leading-axis sum,
            # i.e. pure vreg adds on the VPU; no per-tile cross-lane XLU reduce.
            return v.reshape(groups, _SUBLANES, _LANES).sum(axis=0)

        # Fused, lane-dense accumulator block (4 quantities stacked on sublanes).
        out_ref[0, 0, 0:8, :] += fold(bce)        # sum of BCE terms
        out_ref[0, 0, 8:16, :] += fold(sig * t)   # dice intersection
        out_ref[0, 0, 16:24, :] += fold(sig)      # sum sigmoid(pred)
        out_ref[0, 0, 24:32, :] += fold(t)        # sum target

    return kernel


def bce_dice_loss(pred, target, wb=1.0, wd=1.0, *, rows_per_tile=None):
    """Equivalent of the PyTorch BCEWithLogitsLoss(wb, wd) module forward."""
    assert pred.shape == target.shape
    B = pred.shape[0]
    N = math.prod(pred.shape[1:])

    rows_needed = _cdiv(N, _LANES)
    if rows_per_tile is None:
        rows = min(_ROWS_TARGET, _cdiv(rows_needed, _SUBLANES) * _SUBLANES)
    else:
        rows = int(rows_per_tile)
    assert rows % _SUBLANES == 0

    n_tiles = _cdiv(rows_needed, rows)
    # Keep both v7x TensorCores busy even when B == 1 by splitting the
    # N-reduction across a second "parallel" grid axis.
    splits = 2 if (B == 1 and n_tiles >= 2) else 1
    tiles_per_split = _cdiv(n_tiles, splits)
    rows_padded = splits * tiles_per_split * rows
    n_pad = rows_padded * _LANES
    needs_mask = n_pad != N

    def prep(x):
        x = x.reshape(B, N)          # keep native dtype; cast inside the kernel
        if needs_mask:
            x = jnp.pad(x, ((0, 0), (0, n_pad - N)))
        return x.reshape(B, rows_padded, _LANES)

    pred_t = prep(pred)
    targ_t = prep(target)

    kernel = _make_kernel(N, rows, tiles_per_split, needs_mask)

    partials = pl.pallas_call(
        kernel,
        out_shape=jax.ShapeDtypeStruct(
            (B, splits, 4 * _SUBLANES, _LANES), jnp.float32),
        grid_spec=pltpu.PrefetchScalarGridSpec(
            num_scalar_prefetch=0,
            grid=(B, splits, tiles_per_split),
            in_specs=[
                pl.BlockSpec((1, rows, _LANES),
                             lambda b, s, k: (b, s * tiles_per_split + k, 0)),
                pl.BlockSpec((1, rows, _LANES),
                             lambda b, s, k: (b, s * tiles_per_split + k, 0)),
            ],
            out_specs=pl.BlockSpec((1, 1, 4 * _SUBLANES, _LANES),
                                   lambda b, s, k: (b, s, 0, 0)),
        ),
        compiler_params=pltpu.CompilerParams(
            dimension_semantics=("parallel", "parallel", "arbitrary")),
    )(pred_t, targ_t)

    # Tiny final reduce + scalar combine in JAX (matches torch semantics).
    sums = partials.reshape(B, splits, 4, _SUBLANES, _LANES).sum(axis=(1, 3, 4))
    bce_sum, inter, psum, tsum = sums[:, 0], sums[:, 1], sums[:, 2], sums[:, 3]

    smooth = 1.0
    bce_loss = jnp.sum(bce_sum) / (B * N)                       # 'mean' reduction
    dice_score = (2.0 * inter + smooth) / (psum + tsum + smooth)
    dice_loss = 1.0 - jnp.sum(dice_score) / B
    return wd * dice_loss + wb * bce_loss


if __name__ == "__main__":
    key = jax.random.PRNGKey(0)
    k1, k2, k3, k4 = jax.random.split(key, 4)

    def ref_loss(pred, target, wb=1.0, wd=1.0):
        b = pred.shape[0]
        x = pred.reshape(b, -1).astype(jnp.float32)
        t = target.reshape(b, -1).astype(jnp.float32)
        bce = jnp.mean(jnp.maximum(x, 0.0) - x * t
                       + jnp.log1p(jnp.exp(-jnp.abs(x))))
        sig = jax.nn.sigmoid(x)
        dsc = (2.0 * jnp.sum(sig * t, 1) + 1.0) / (
            jnp.sum(sig, 1) + jnp.sum(t, 1) + 1.0)
        return wd * (1.0 - jnp.sum(dsc) / b) + wb * bce

    # Main case: B=2, N = 4*16*16 = 1024 (lane/sublane aligned, no padding).
    B, C, H, W = 2, 4, 16, 16
    pred = jax.random.normal(k1, (B, C, H, W), dtype=jnp.float32)      # logits
    target = jax.random.bernoulli(k2, 0.5, (B, C, H, W)).astype(jnp.float32)
    loss = jax.block_until_ready(bce_dice_loss(pred, target, wb=1.0, wd=1.0))
    assert jnp.allclose(loss, ref_loss(pred, target), rtol=1e-5, atol=1e-5), \
        (loss, ref_loss(pred, target))

    # Unaligned N -> exercises the zero-pad + in-kernel mask path.
    pred2 = jax.random.normal(k3, (2, 3, 15, 17), dtype=jnp.float32)
    targ2 = jax.random.bernoulli(k4, 0.5, (2, 3, 15, 17)).astype(jnp.float32)
    loss2 = jax.block_until_ready(bce_dice_loss(pred2, targ2))
    assert jnp.allclose(loss2, ref_loss(pred2, targ2), rtol=1e-5, atol=1e-5), \
        (loss2, ref_loss(pred2, targ2))

    # B == 1 with several N-tiles -> exercises the dual-split (2-TC) axis and
    # multi-step accumulation along the reduction grid axis (+ masking).
    pred3 = jax.random.normal(k1, (1, 3, 33, 33), dtype=jnp.float32)
    targ3 = jax.random.bernoulli(k2, 0.5, (1, 3, 33, 33)).astype(jnp.float32)
    loss3 = jax.block_until_ready(bce_dice_loss(pred3, targ3, rows_per_tile=8))
    assert jnp.allclose(loss3, ref_loss(pred3, targ3), rtol=1e-5, atol=1e-5), \
        (loss3, ref_loss(pred3, targ3))

    print("KERNEL_OK")
</pallas_src>

<mosaic_0001>
module attributes {stable_mosaic.version = 11 : i64} {
  func.func @kernel(%arg0: i32, %arg1: i32, %arg2: i32, %arg3: memref<1x8x128xf32, #tpu.memory_space<vmem>>, %arg4: memref<1x8x128xf32, #tpu.memory_space<vmem>>, %arg5: memref<1x1x32x128xf32, #tpu.memory_space<vmem>>) attributes {dimension_semantics = [#tpu.dimension_semantics<parallel>, #tpu.dimension_semantics<parallel>, #tpu.dimension_semantics<arbitrary>], iteration_bounds = array<i64: 2, 1, 1>, scalar_prefetch = 0 : i64, scratch_operands = 0 : i64, tpu.core_type = #tpu.core_type<tc>, window_params = [{transform_indices = @transform_0, window_bounds = array<i64: 1, 8, 128>}, {transform_indices = @transform_1, window_bounds = array<i64: 1, 8, 128>}, {transform_indices = @transform_2, window_bounds = array<i64: 1, 1, 32, 128>}]} {
    %c0_i32 = arith.constant 0 : i32
    %0 = arith.cmpi eq, %arg2, %c0_i32 : i32
    %1 = arith.extui %0 : i1 to i32
    %c0_i32_0 = arith.constant 0 : i32
    %2 = arith.cmpi ne, %1, %c0_i32_0 : i32
    scf.if %2 {
      %cst_44 = arith.constant 0.000000e+00 : f32
      %60 = vector.broadcast %cst_44 : f32 to vector<1x1x32x128xf32>
      %c0_45 = arith.constant 0 : index
      %c0_46 = arith.constant 0 : index
      %c0_47 = arith.constant 0 : index
      %c0_48 = arith.constant 0 : index
      %61 = vector.load %arg5[%c0_45, %c0_46, %c0_47, %c0_48] : memref<1x1x32x128xf32, #tpu.memory_space<vmem>>, vector<1x1x32x128xf32>
      tpu.vector_store %arg5[%c0_45, %c0_46, %c0_47, %c0_48], %60 {strides = array<i32>} : memref<1x1x32x128xf32, #tpu.memory_space<vmem>>, vector<1x1x32x128xf32>,
    } else {
    }
    %c0 = arith.constant 0 : index
    %c0_1 = arith.constant 0 : index
    %c0_2 = arith.constant 0 : index
    %3 = vector.load %arg3[%c0, %c0_1, %c0_2] : memref<1x8x128xf32, #tpu.memory_space<vmem>>, vector<1x8x128xf32>
    %4 = vector.shape_cast %3 : vector<1x8x128xf32> to vector<8x128xf32>
    %c0_3 = arith.constant 0 : index
    %c0_4 = arith.constant 0 : index
    %c0_5 = arith.constant 0 : index
    %5 = vector.load %arg4[%c0_3, %c0_4, %c0_5] : memref<1x8x128xf32, #tpu.memory_space<vmem>>, vector<1x8x128xf32>
    %6 = vector.shape_cast %5 : vector<1x8x128xf32> to vector<8x128xf32>
    %7 = math.absf %4 : vector<8x128xf32>
    %cst = arith.constant 0.000000e+00 : f32
    %8 = vector.broadcast %cst : f32 to vector<8x128xf32>
    %9 = arith.subf %8, %7 : vector<8x128xf32>
    %10 = math.exp %9 : vector<8x128xf32>
    %cst_6 = arith.constant 0.000000e+00 : f32
    %11 = vector.broadcast %cst_6 : f32 to vector<8x128xf32>
    %12 = arith.maximumf %4, %11 : vector<8x128xf32>
    %13 = arith.mulf %4, %6 : vector<8x128xf32>
    %14 = arith.subf %12, %13 : vector<8x128xf32>
    %cst_7 = arith.constant 1.000000e+00 : f32
    %15 = vector.broadcast %cst_7 : f32 to vector<8x128xf32>
    %16 = arith.addf %15, %10 : vector<8x128xf32>
    %17 = math.log %16 : vector<8x128xf32>
    %18 = arith.addf %14, %17 : vector<8x128xf32>
    %cst_8 = arith.constant 1.000000e+00 : f32
    %19 = vector.broadcast %cst_8 : f32 to vector<8x128xf32>
    %20 = arith.addf %19, %10 : vector<8x128xf32>
    %cst_9 = arith.constant 1.000000e+00 : f32
    %21 = vector.broadcast %cst_9 : f32 to vector<8x128xf32>
    %22 = arith.divf %21, %20 : vector<8x128xf32>
    %cst_10 = arith.constant 0.000000e+00 : f32
    %23 = vector.broadcast %cst_10 : f32 to vector<8x128xf32>
    %24 = arith.cmpf oge, %4, %23 : vector<8x128xf32>
    %25 = arith.mulf %10, %22 : vector<8x128xf32>
    %26 = arith.select %24, %22, %25 : vector<8x128xi1>, vector<8x128xf32>
    %c0_11 = arith.constant 0 : index
    %c0_12 = arith.constant 0 : index
    %c0_13 = arith.constant 0 : index
    %c0_14 = arith.constant 0 : index
    %27 = vector.load %arg5[%c0_11, %c0_12, %c0_13, %c0_14] : memref<1x1x32x128xf32, #tpu.memory_space<vmem>>, vector<1x1x8x128xf32>
    %28 = vector.shape_cast %27 : vector<1x1x8x128xf32> to vector<8x128xf32>
    %29 = vector.shape_cast %18 : vector<8x128xf32> to vector<1x8x128xf32>
    %cst_15 = arith.constant dense<0.000000e+00> : vector<8x128xf32>
    %30 = vector.multi_reduction <add>, %29, %cst_15 [0] : vector<1x8x128xf32> to vector<8x128xf32>
    %31 = arith.addf %28, %30 : vector<8x128xf32>
    %c0_16 = arith.constant 0 : index
    %c0_17 = arith.constant 0 : index
    %c0_18 = arith.constant 0 : index
    %c0_19 = arith.constant 0 : index
    %32 = vector.load %arg5[%c0_16, %c0_17, %c0_18, %c0_19] : memref<1x1x32x128xf32, #tpu.memory_space<vmem>>, vector<1x1x8x128xf32>
    %33 = vector.shape_cast %32 : vector<1x1x8x128xf32> to vector<8x128xf32>
    %34 = vector.shape_cast %31 : vector<8x128xf32> to vector<1x1x8x128xf32>
    tpu.vector_store %arg5[%c0_16, %c0_17, %c0_18, %c0_19], %34 {strides = array<i32>} : memref<1x1x32x128xf32, #tpu.memory_space<vmem>>, vector<1x1x8x128xf32>,
    %c0_20 = arith.constant 0 : index
    %c0_21 = arith.constant 0 : index
    %c8 = arith.constant 8 : index
    %c0_22 = arith.constant 0 : index
    %35 = vector.load %arg5[%c0_20, %c0_21, %c8, %c0_22] : memref<1x1x32x128xf32, #tpu.memory_space<vmem>>, vector<1x1x8x128xf32>
    %36 = vector.shape_cast %35 : vector<1x1x8x128xf32> to vector<8x128xf32>
    %37 = arith.mulf %26, %6 : vector<8x128xf32>
    %38 = vector.shape_cast %37 : vector<8x128xf32> to vector<1x8x128xf32>
    %cst_23 = arith.constant dense<0.000000e+00> : vector<8x128xf32>
    %39 = vector.multi_reduction <add>, %38, %cst_23 [0] : vector<1x8x128xf32> to vector<8x128xf32>
    %40 = arith.addf %36, %39 : vector<8x128xf32>
    %c0_24 = arith.constant 0 : index
    %c0_25 = arith.constant 0 : index
    %c8_26 = arith.constant 8 : index
    %c0_27 = arith.constant 0 : index
    %41 = vector.load %arg5[%c0_24, %c0_25, %c8_26, %c0_27] : memref<1x1x32x128xf32, #tpu.memory_space<vmem>>, vector<1x1x8x128xf32>
    %42 = vector.shape_cast %41 : vector<1x1x8x128xf32> to vector<8x128xf32>
    %43 = vector.shape_cast %40 : vector<8x128xf32> to vector<1x1x8x128xf32>
    tpu.vector_store %arg5[%c0_24, %c0_25, %c8_26, %c0_27], %43 {strides = array<i32>} : memref<1x1x32x128xf32, #tpu.memory_space<vmem>>, vector<1x1x8x128xf32>,
    %c0_28 = arith.constant 0 : index
    %c0_29 = arith.constant 0 : index
    %c16 = arith.constant 16 : index
    %c0_30 = arith.constant 0 : index
    %44 = vector.load %arg5[%c0_28, %c0_29, %c16, %c0_30] : memref<1x1x32x128xf32, #tpu.memory_space<vmem>>, vector<1x1x8x128xf32>
    %45 = vector.shape_cast %44 : vector<1x1x8x128xf32> to vector<8x128xf32>
    %46 = vector.shape_cast %26 : vector<8x128xf32> to vector<1x8x128xf32>
    %cst_31 = arith.constant dense<0.000000e+00> : vector<8x128xf32>
    %47 = vector.multi_reduction <add>, %46, %cst_31 [0] : vector<1x8x128xf32> to vector<8x128xf32>
    %48 = arith.addf %45, %47 : vector<8x128xf32>
    %c0_32 = arith.constant 0 : index
    %c0_33 = arith.constant 0 : index
    %c16_34 = arith.constant 16 : index
    %c0_35 = arith.constant 0 : index
    %49 = vector.load %arg5[%c0_32, %c0_33, %c16_34, %c0_35] : memref<1x1x32x128xf32, #tpu.memory_space<vmem>>, vector<1x1x8x128xf32>
    %50 = vector.shape_cast %49 : vector<1x1x8x128xf32> to vector<8x128xf32>
    %51 = vector.shape_cast %48 : vector<8x128xf32> to vector<1x1x8x128xf32>
    tpu.vector_store %arg5[%c0_32, %c0_33, %c16_34, %c0_35], %51 {strides = array<i32>} : memref<1x1x32x128xf32, #tpu.memory_space<vmem>>, vector<1x1x8x128xf32>,
    %c0_36 = arith.constant 0 : index
    %c0_37 = arith.constant 0 : index
    %c24 = arith.constant 24 : index
    %c0_38 = arith.constant 0 : index
    %52 = vector.load %arg5[%c0_36, %c0_37, %c24, %c0_38] : memref<1x1x32x128xf32, #tpu.memory_space<vmem>>, vector<1x1x8x128xf32>
    %53 = vector.shape_cast %52 : vector<1x1x8x128xf32> to vector<8x128xf32>
    %54 = vector.shape_cast %6 : vector<8x128xf32> to vector<1x8x128xf32>
    %cst_39 = arith.constant dense<0.000000e+00> : vector<8x128xf32>
    %55 = vector.multi_reduction <add>, %54, %cst_39 [0] : vector<1x8x128xf32> to vector<8x128xf32>
    %56 = arith.addf %53, %55 : vector<8x128xf32>
    %c0_40 = arith.constant 0 : index
    %c0_41 = arith.constant 0 : index
    %c24_42 = arith.constant 24 : index
    %c0_43 = arith.constant 0 : index
    %57 = vector.load %arg5[%c0_40, %c0_41, %c24_42, %c0_43] : memref<1x1x32x128xf32, #tpu.memory_space<vmem>>, vector<1x1x8x128xf32>
    %58 = vector.shape_cast %57 : vector<1x1x8x128xf32> to vector<8x128xf32>
    %59 = vector.shape_cast %56 : vector<8x128xf32> to vector<1x1x8x128xf32>
    tpu.vector_store %arg5[%c0_40, %c0_41, %c24_42, %c0_43], %59 {strides = array<i32>} : memref<1x1x32x128xf32, #tpu.memory_space<vmem>>, vector<1x1x8x128xf32>,
    return
  }
  func.func @transform_0(%arg0: i32, %arg1: i32, %arg2: i32) -> (i32, i32, i32) {
    %c1_i32 = arith.constant 1 : i32
    %0 = arith.muli %arg1, %c1_i32 : i32
    %1 = arith.addi %0, %arg2 : i32
    %c0_i32 = arith.constant 0 : i32
    %c0_i32_0 = arith.constant 0 : i32
    return %arg0, %1, %c0_i32 : i32, i32, i32
  }
  func.func @transform_1(%arg0: i32, %arg1: i32, %arg2: i32) -> (i32, i32, i32) {
    %c1_i32 = arith.constant 1 : i32
    %0 = arith.muli %arg1, %c1_i32 : i32
    %1 = arith.addi %0, %arg2 : i32
    %c0_i32 = arith.constant 0 : i32
    %c0_i32_0 = arith.constant 0 : i32
    return %arg0, %1, %c0_i32 : i32, i32, i32
  }
  func.func @transform_2(%arg0: i32, %arg1: i32, %arg2: i32) -> (i32, i32, i32, i32) {
    %c0_i32 = arith.constant 0 : i32
    %c0_i32_0 = arith.constant 0 : i32
    %c0_i32_1 = arith.constant 0 : i32
    return %arg0, %arg1, %c0_i32, %c0_i32_0 : i32, i32, i32, i32
  }
}

</mosaic_0001>

<bundles_post_ra>
// kernel: tpu_custom_call.1
= control target key start
LH: loop header
LB: loop body
LE: loop exit
PB: predicated region body
PF: predicated region fallthrough
CT: control target
= control target key end

     0   :  { %7 = vsyncpa [#allocation3], 0  ;;  %s889_s0 = inlined_call_operand.hbm [shape: f32[2,8,128], index: 0, kind: input, shape index: {}]   ;;  %s890_s1 = inlined_call_operand.hbm [shape: f32[2,8,128], index: 1, kind: input, shape index: {}]   ;;  %s891_s2 = inlined_call_operand.hbm [shape: f32[2,1,32,128], index: 2, kind: output, shape index: {}]  }
   0x1   :  { %9 = vsyncpa [#allocation3 + $0x1], 0 }
   0x2   :  { %10 = vsyncpa [#allocation6], 0 }
   0x3   :  { %12 = vsyncpa [#allocation6 + $0x1], 0 }
   0x4   :  { %13 = vsyncpa [#allocation4], 0 }
   0x5   :  { %15 = vsyncpa [#allocation4 + $0x1], 0  ;;  %s666_s9 = smov 0   ;;  %s668_s10 = smov 0  }
   0x6   :  { %s670_s11 = smov 0   ;;  %s672_s12 = smov 0  }
   0x7   :  { %s674_s13 = smov 0   ;;  %s676_s14 = smov 0  }
   0x8 LB: > { %s404_s15 = sadd.s32 4294967295, %s644_s14   ;;  %s405_s16 = sadd.s32 4294967294, %s644_s14   ;;  %s644_s14 = sphi %s676_s14, %s21_s14   ;;  %s640_s13 = sphi %s674_s13, %s911_s13   ;;  %s636_s12 = sphi %s672_s12, %s910_s12   ;;  %s632_s11 = sphi %s670_s11, %s909_s11   ;;  %s628_s10 = sphi %s668_s10, %s908_s10   ;;  %s624_s9 = sphi %s666_s9, %s907_s9  }
   0x9   : > { %s40_s17 = sadd.s32 1, %s640_s13  ;;  %s51_s18 = sadd.s32 1, %s632_s11 }
   0xa   : > { %p42_p0 = scmp.ge.s32.totalorder %s40_s17, 2  ;;  %p58_p1 = scmp.ne.s32.totalorder %s632_s11, %s628_s10 }
   0xb   : > { %p59_p2 = scmp.eq.s32.totalorder %s644_s14, 0  ;;  %p64_p3 = scmp.ne.s32.totalorder %s628_s10, %s624_s9 }
   0xc   : > { %s913_s17 = smov (%p42_p0, %s40_s17), 0  ;;  %p65_p5 = scmp.eq.s32.totalorder %s404_s15, 0 }
   0xd   : > { %p707_p4 = por %p59_p2, %p58_p1  ;;  %s46_s20 = ssub.s32 %s640_s13, %s913_s17 }
   0xe   : > { %p120_p6 = scmp.eq.s32.totalorder %s404_s15, 1  ;;  %p49_p7 = scmp.eq.s32.totalorder %s46_s20, 0 }
   0xf   : > { %p713_p8 = por %p65_p5, %p64_p3  ;;  %p126_p10 = scmp.eq.s32.totalorder %s405_s16, 1 }
  0x10   : > { %p717_p9 = por %p120_p6, %p58_p1  ;;  %p439_p13 = scmp.lt.s32.totalorder %s644_s14, 2 }
  0x11   : > { %s895_s21 = scalar_select %p713_p8, 1, 0 }
  0x12   : > { %s896_s22 = scalar_select %p717_p9, 1, 0 }
  0x13   : > { %s722_s23 = scalar_select %p49_p7, %s632_s11, %s51_s18  }
  0x14   : > { %p724_p11 = por %p126_p10, %p64_p3  ;;  %s731_s25 = sand.u32 1, %s632_s11  }
  0x15   : > { %s408_s26 = sshll.u32 %s731_s25, 3  ;;  %s409_s27 = sshll.u32 %s640_s13, 7 }
  0x16   : > { %s897_s24 = scalar_select %p724_p11, 1, 0 }
  0x17   : > { %s740_s30 = scalar_lea.hbm %s889_s0, %s409_s27  ;;  %s150_s3 = scalar_lea.vmem [#allocation2], %s408_s26 }
  0x18   : > { %s159_s4 = sshll.u32 %s150_s3, 4  ;;  %p748_p0 = pnand %p439_p13, %p707_p4  ;;  %s744_s4 = int_to_ptr.vmem [resolvable:$true] %s159_s4 }
  0x19   : > { %s147_s6 = scalar_lea.sflag [#allocation3], %s731_s25  ;;  %s498_s7 = scalar_lea.hbm %s740_s30, 128 }
  0x1a   : > { %p499_p3 = scmp.ne.s32.totalorder %s740_s30, %s498_s7  ;;  %p500_p5 = pneg %p748_p0 }
  0x1b   : > { %s503_s16 = scalar_lea.hbm %s889_s0, 256  ;;  %p504_p4 = scmp.lt.u32.totalorder %s740_s30, %s889_s0 }
  0x1c   : > { %p501_p6 = pnand %p500_p5, %p499_p3  ;;  %p505_p10 = scmp.lt.u32.totalorder %s503_s16, %s498_s7 }
  0x1d   : > { %p507_p12 = scmp.lt.u32.totalorder %s498_s7, %s740_s30 }
  0x1e   : > { %p502_p7 = pneg %p501_p6  ;;  %p506_p13 = por %p505_p10, %p504_p4 }
  0x20   : > { %p508_p1 = por %p507_p12, %p506_p13 }
  0x22   : > { %p509_p2 = pnand %p508_p1, %p502_p7 }
  0x24   : > { %512 = shalt.err (!%p509_p2)
}
  0x25   : > { %s513_s20 = scalar_lea.vmem %s744_s4, 128  ;;  %s646_s28 = smov [#allocation2]  }
  0x26   : > { %p514_p3 = scmp.ne.s32.totalorder %s744_s4, %s513_s20  ;;  %s518_s29 = sshll.u32 %s646_s28, 4  ;;  %s519_s29 = int_to_ptr.vmem [resolvable:$false] %s518_s29 }
  0x27   : > { %s520_s3 = scalar_lea.vmem %s519_s29, 256  ;;  %p521_p9 = scmp.lt.s32.totalorder %s744_s4, %s519_s29 }
  0x28   : > { %p516_p6 = pnand %p514_p3, %p500_p5  ;;  %p522_p4 = scmp.lt.s32.totalorder %s520_s3, %s513_s20 }
  0x2a   : > { %p517_p11 = pneg %p516_p6  ;;  %p523_p10 = por %p522_p4, %p521_p9 }
  0x2c   : > { %p524_p12 = pnand %p523_p10, %p517_p11 }
  0x2e   : > { %527 = shalt.err (!%p524_p12)
}
  0x2f   : > { %431 = dma.hbm_to_vmem [thread:$0]  (!%p748_p0), %s740_s30, 128, %s744_s4, %s147_s6  }
  0x30   : > { %p899_p1 = scmp.lt.s32.totalorder %s644_s14, 3  ;;  %p900_p2 = scmp.ge.s32.totalorder %s644_s14, 1 }
  0x31   : > { %s793_s16 = scalar_lea.hbm %s890_s1, %s409_s27  ;;  %s170_s18 = scalar_lea.vmem [#allocation5], %s408_s26 }
  0x32   : > { %p784_p7 = pnand %p900_p2, %p899_p1  ;;  %s179_s19 = sshll.u32 %s170_s18, 4  ;;  %s180_s19 = int_to_ptr.vmem [resolvable:$true] %s179_s19 }
  0x33   : > { %s167_s30 = scalar_lea.sflag [#allocation6], %s731_s25  ;;  %s528_s4 = scalar_lea.hbm %s793_s16, 128 }
  0x34   : > { %s901_s7 = scalar_select %p784_p7, 1, 0 }
  0x35   : > { %p529_p9 = scmp.ne.s32.totalorder %s793_s16, %s528_s4  ;;  %s533_s27 = scalar_lea.hbm %s890_s1, 256 }
  0x36   : > { %p534_p3 = scmp.lt.u32.totalorder %s793_s16, %s890_s1  ;;  %p535_p6 = scmp.lt.u32.totalorder %s533_s27, %s528_s4 }
  0x37   : > { %p531_p11 = pnand %p529_p9, %p500_p5  ;;  %p537_p10 = scmp.lt.u32.totalorder %s528_s4, %s793_s16 }
  0x38   : > { %p536_p4 = por %p535_p6, %p534_p3 }
  0x39   : > { %p532_p13 = pneg %p531_p11 }
  0x3a   : > { %p538_p12 = por %p537_p10, %p536_p4 }
  0x3c   : > { %p539_p1 = pnand %p538_p12, %p532_p13 }
  0x3e   : > { %542 = shalt.err (!%p539_p1)
}
  0x3f   : > { %s543_s25 = scalar_lea.vmem %s180_s19, 128  ;;  %s647_s26 = smov [#allocation5]  }
  0x40   : > { %p544_p2 = scmp.ne.s32.totalorder %s180_s19, %s543_s25  ;;  %s548_s3 = sshll.u32 %s647_s26, 4  ;;  %s549_s3 = int_to_ptr.vmem [resolvable:$false] %s548_s3 }
  0x41   : > { %s550_s8 = scalar_lea.vmem %s549_s3, 256  ;;  %p551_p8 = scmp.lt.s32.totalorder %s180_s19, %s549_s3 }
  0x42   : > { %p546_p9 = pnand %p544_p2, %p500_p5  ;;  %p552_p7 = scmp.lt.s32.totalorder %s550_s8, %s543_s25 }
  0x44   : > { %p547_p11 = pneg %p546_p9  ;;  %p553_p3 = por %p552_p7, %p551_p8 }
  0x46   : > { %p554_p6 = pnand %p553_p3, %p547_p11 }
  0x48   : > { %557 = shalt.err (!%p554_p6)
}
  0x49   : > { %434 = dma.hbm_to_vmem [thread:$0]  (!%p748_p0), %s793_s16, 128, %s180_s19, %s167_s30  }
  0x4a   : > { %p902_p13 = scmp.ne.s32.totalorder %s901_s7, 0 }
  0x4b   : > { %s820_s15 = sand.u32 (!%p902_p13), 1, %s628_s10   ;;  %p903_p5 = scmp.ne.s32.totalorder (!%p902_p13), %s895_s21, 0 }
  0x4c   : > { %188 = sbr.rel (%p902_p13) target bundleno = 138 (0x8a), region = 28  ;;  %s413_s18 = sshll.u32 (!%p902_p13), %s820_s15, 3 }
  0x4d   : > { %s191_s4 = scalar_lea.sflag (!%p902_p13), [#allocation3], %s820_s15  ;;  %s194_s6 = scalar_lea.vmem (!%p902_p13), [#allocation2], %s413_s18 }
  0x53   : > { %611 = dma.done.wait (%p903_p5), %s191_s4, 128  }
  0x54   : > { %613 = vsyncadd (%p903_p5), %s191_s4, 4294967168  ;;  %s200_s5 = scalar_lea.sflag [#allocation6], %s820_s15  ;;  %s203_s16 = scalar_lea.vmem [#allocation5], %s413_s18 }
  0x55   : > { %615 = dma.done.wait (%p903_p5), %s200_s5, 128  }
  0x56   : > { %617 = vsyncadd (%p903_p5), %s200_s5, 4294967168  ;;  %s415_s7 = sshll.u32 %s820_s15, 5  ;;  %v239_v0 = vld [vmem:[%s194_s6] sm:$0xff]  ;;  %v240_v1 = vld [vmem:[%s203_s16] sm:$0xff]  ;;  %s421_s21 = sshll.u32 %s636_s12, 9 }
  0x57   : > { %v241_v2 = vand.u32 2147483647, %v239_v0  ;;  %s228_s19 = scalar_lea.vmem [#allocation7], %s415_s7  ;;  %v245_v7 = vmax.f32 %v239_v0, 0.0  ;;  %v246_v8 = vmul.f32 %v240_v1, %v239_v0  ;;  %vm254_vm0 = vcmp.ge.f32.partialorder %v239_v0, 0.0  ;;  %s838_s28 = scalar_lea.hbm %s891_s2, %s421_s21 }
  0x58   : > { %273 = vst [vmem:[%s228_s19 + $0x18] sm:$0xff] %v240_v1  ;;  %s290_s30 = sshll.u32 %s228_s19, 4  ;;  %s275_s29 = scalar_lea.sflag [#allocation4], %s820_s15  ;;  %s840_s30 = int_to_ptr.vmem [resolvable:$true] %s290_s30 }
  0x59   : > { %v242_v3 = vsub.f32 0.0, %v241_v2  ;;  %v247_v9 = vsub.f32 %v245_v7, %v246_v8  ;;  %s558_s25 = scalar_lea.vmem %s840_s30, 512  ;;  %p904_p0 = scmp.ne.s32.totalorder %s896_s22, 0 }
  0x5a   : > { %p559_p8 = scmp.ne.s32.totalorder %s840_s30, %s558_s25  ;;  %s648_s12 = smov [#allocation7]  }
  0x5b   : > { %v243_v4 = vmul.f32 1.442695, %v242_v3  ;;  %s562_s26 = sshll.u32 %s648_s12, 4  ;;  %s563_s26 = int_to_ptr.vmem [resolvable:$false] %s562_s26 }
  0x5c   : > { %p560_p7 = pnand %p559_p8, %p904_p0  ;;  %s564_s3 = scalar_lea.vmem %s563_s26, 1024 }
  0x5d   : > { %492 = vpow2.f32 %v243_v4  ;;  %p565_p10 = scmp.lt.s32.totalorder %s840_s30, %s563_s26  ;;  %p566_p12 = scmp.lt.s32.totalorder %s564_s3, %s558_s25 }
  0x5e   : > { %p561_p4 = pneg %p560_p7 }
  0x5f   : > { %p567_p1 = por %p566_p12, %p565_p10 }
  0x61   : > { %p568_p2 = pnand %p567_p1, %p561_p4 }
  0x67   : > { %v493_v5 = vpop.eup %492 }
  0x68   : > { %v248_v6 = vadd.f32 1.0, %v493_v5 }
  0x6a   : > { %494 = vlog2.f32 %v248_v6 }
  0x6b   : > { %496 = vrcp.f32 %v248_v6 }
  0x74   : > { %v495_v10 = vpop.eup %494 }
  0x75   : > { %v497_v11 = vpop.eup %496  ;;  %v250_v12 = vmul.f32 0.6931472, %v495_v10 }
  0x76   : > { %v255_v13 = vmul.f32 %v497_v11, %v493_v5 }
  0x77   : > { %v251_v14 = vadd.f32 %v250_v12, %v247_v9 }
  0x78   : > { %v256_v15 = vsel %vm254_vm0, %v497_v11, %v255_v13 }
  0x79   : > { %v262_v16 = vmul.f32 %v256_v15, %v240_v1  ;;  %260 = vst [vmem:[%s228_s19] sm:$0xff] %v251_v14  ;;  %269 = vst [vmem:[%s228_s19 + $0x10] sm:$0xff] %v256_v15 }
  0x7b   : > { %265 = vst [vmem:[%s228_s19 + $0x8] sm:$0xff] %v262_v16 }
  0x7c   : > { %571 = shalt.err (!%p568_p2)
}
  0x7d   : > { %s572_s8 = scalar_lea.hbm %s838_s28, 512  ;;  %s576_s6 = scalar_lea.hbm %s891_s2, 1024 }
  0x7e   : > { %p573_p9 = scmp.ne.s32.totalorder %s838_s28, %s572_s8  ;;  %p577_p6 = scmp.lt.u32.totalorder %s838_s28, %s891_s2 }
  0x7f   : > { %p578_p13 = scmp.lt.u32.totalorder %s576_s6, %s572_s8  ;;  %p580_p8 = scmp.lt.u32.totalorder %s572_s8, %s838_s28 }
  0x80   : > { %p574_p11 = pnand %p573_p9, %p904_p0 }
  0x81   : > { %p579_p5 = por %p578_p13, %p577_p6 }
  0x82   : > { %p575_p3 = pneg %p574_p11 }
  0x83   : > { %p581_p7 = por %p580_p8, %p579_p5 }
  0x85   : > { %p582_p4 = pnand %p581_p7, %p575_p3 }
  0x87   : > { %585 = shalt.err (!%p582_p4)
}
  0x88   : > { %s649_s7 = smov 128   ;;  %s650_s19 = smov 8  }
  0x89   : > { %426 = dma.vmem_to_hbm [thread:$0]  (%p904_p0), %s840_s30, 512, %s838_s28, %s275_s29, %s649_s7, %s649_s7, %s650_s19  }
  0x8a PF: > { %s305_s21 = sand.u32 1, %s624_s9   ;;  %p905_p10 = scmp.ne.s32.totalorder %s897_s24, 0 }
  0x8b   : > { %p906_p12 = scmp.ge.s32.totalorder %s644_s14, 2  ;;  %s306_s20 = scalar_lea.sflag [#allocation4], %s305_s21 }
  0x8d   : > { %p436_p1 = pnand %p906_p12, %p905_p10 }
  0x8f   : > { %619 = dma.done.wait (!%p436_p1), %s306_s20, 512  }
  0x90   : > { %621 = vsyncadd (!%p436_p1), %s306_s20, 4294966784  ;;  %s21_s14 = sadd.s32 1, %s644_s14   ;;  %s907_s9 = smov %s628_s10 }
  0x91   : > { %p18_p2 = scmp.ge.s32.totalorder %s21_s14, 4   ;;  %s908_s10 = smov %s632_s11 }
  0x92   : > { %s909_s11 = smov %s722_s23  ;;  %s910_s12 = smov %s640_s13 }
  0x93   : > { %s911_s13 = smov %s913_s17  ;;  %20 = sbr.rel (!%p18_p2) target bundleno = 8 (0x8), region = 90 }
  0x9a   :  { %311 = vsyncpa [#allocation3], 1 }
  0x9b   :  { %313 = vsyncpa [#allocation3 + $0x1], 1 }
  0x9c   :  { %314 = vsyncpa [#allocation6], 1 }
  0x9d   :  { %316 = vsyncpa [#allocation6 + $0x1], 1 }
  0x9e   :  { %317 = vsyncpa [#allocation4], 1 }
  0x9f   :  { %319 = vsyncpa [#allocation4 + $0x1], 1 }

</bundles_post_ra>
